<compile_context>
chip_gen: v7x
topology: tpu7x:2x2x1
jax: 0.10.0
libtpu: 0.0.40
codegen_flags: <defaults>
</compile_context>

<pallas_src>
from functools import partial

import jax
import jax.numpy as jnp
from jax.experimental import pallas as pl
from jax.experimental.pallas import tpu as pltpu


NEG_INF = -1e30


# ----------------------------------------------------------------------------
# Stage 1: fused K/V projection (1x1 conv, channels-first).
#   x: (B, C, Npad) bf16, w: (2C, C) bf16  ->  kv: (B, 2C, Npad) bf16
# ----------------------------------------------------------------------------
def _kv_proj_kernel(x_ref, w_ref, kv_ref):
    kv_ref[0] = jnp.dot(w_ref[...], x_ref[0],
                        preferred_element_type=jnp.float32
                        ).astype(kv_ref.dtype)


def _project_kv(x_bf16, w_bf16, tn, vmem_limit):
    B, C, n_pad = x_bf16.shape
    two_c = w_bf16.shape[0]
    return pl.pallas_call(
        _kv_proj_kernel,
        out_shape=jax.ShapeDtypeStruct((B, two_c, n_pad), jnp.bfloat16),
        grid_spec=pltpu.PrefetchScalarGridSpec(
            num_scalar_prefetch=0,
            grid=(B, n_pad // tn),
            in_specs=[
                pl.BlockSpec((1, C, tn), lambda b, i: (b, 0, i)),
                # Constant block index -> weights DMA'd once, never re-fetched.
                pl.BlockSpec((two_c, C), lambda b, i: (0, 0)),
            ],
            out_specs=pl.BlockSpec((1, two_c, tn), lambda b, i: (b, 0, i)),
        ),
        compiler_params=pltpu.CompilerParams(
            dimension_semantics=("parallel", "parallel"),
            vmem_limit_bytes=vmem_limit),
    )(x_bf16, w_bf16)


# ----------------------------------------------------------------------------
# Stage 2: flash-style cross attention with fused Q projection + residual add.
#   out[:, :, i-tile] = x + softmax(Q^T K / sqrt(C)) @ V^T  (channels-first)
# Per grid step (b, i, j):
#   x:  (C, tq)  (residual + source for Q)     wq: (C, C) constant
#   kv: (2C, tk) = [K; V]                      scores kept as (tk, tq).
# ----------------------------------------------------------------------------
def _flash_cross_attn_kernel(x_ref, wq_ref, kv_ref, o_ref,
                             q_scr, m_scr, l_scr, acc_scr,
                             *, inv_scale, nk_valid, nk_pad, tk):
    j = pl.program_id(2)
    C = q_scr.shape[0]

    @pl.when(j == 0)
    def _():
        # Fused Q projection: Q = Wq @ x_tile, computed once per (b, q-tile).
        x_bf = x_ref[0].astype(jnp.bfloat16)
        q_scr[...] = jnp.dot(wq_ref[...], x_bf,
                             preferred_element_type=jnp.float32
                             ).astype(q_scr.dtype)
        m_scr[...] = jnp.full_like(m_scr, NEG_INF)
        l_scr[...] = jnp.zeros_like(l_scr)
        acc_scr[...] = jnp.zeros_like(acc_scr)

    q = q_scr[...]                          # (C, tq) bf16
    k = kv_ref[0, pl.ds(0, C), :]           # (C, tk) bf16
    v = kv_ref[0, pl.ds(C, C), :]           # (C, tk) bf16

    # Transposed scores s[kv, q] = (K^T Q) * (1/sqrt(C)); contract channels.
    s = jax.lax.dot_general(k, q, (((0,), (0,)), ((), ())),
                            preferred_element_type=jnp.float32) * inv_scale

    if nk_pad != nk_valid:      # static: mask padded kv rows (sublane-only iota)
        kv_idx = jax.lax.broadcasted_iota(jnp.int32, (tk, 1), 0) + j * tk
        s = jnp.where(kv_idx < nk_valid, s, NEG_INF)

    m_prev = m_scr[...]                                            # (1, tq)
    m_new = jnp.maximum(m_prev, jnp.max(s, axis=0, keepdims=True))
    alpha = jnp.exp(m_prev - m_new)                                # (1, tq)
    # NOTE: on v6e/v7x a bf16 exp (bf16 EUP) doubles transcendental throughput
    # when C is small; kept f32 here for v5e portability and accuracy.
    p = jnp.exp(s - m_new)                                         # (tk, tq)

    l_scr[...] = alpha * l_scr[...] + jnp.sum(p, axis=0, keepdims=True)
    acc_scr[...] = alpha * acc_scr[...] + jnp.dot(
        v, p.astype(v.dtype), preferred_element_type=jnp.float32)  # (C, tq)
    m_scr[...] = m_new

    @pl.when(j == pl.num_programs(2) - 1)
    def _():
        inv_l = pl.reciprocal(l_scr[...], approx=True)             # (1, tq)
        o_ref[0] = (x_ref[0] + acc_scr[...] * inv_l).astype(o_ref.dtype)


def _flash_cross_attention(x_pad, wq, kv, *, scale, nk_valid, tq, tk,
                           vmem_limit):
    B, C, nq_pad = x_pad.shape
    nk_pad = kv.shape[-1]
    out_dtype = x_pad.dtype

    kernel = partial(_flash_cross_attn_kernel,
                     inv_scale=1.0 / scale, nk_valid=nk_valid,
                     nk_pad=nk_pad, tk=tk)

    itemsize = jnp.dtype(out_dtype).itemsize
    n_q_tiles = nq_pad // tq
    kv_reads = 1 if tk == nk_pad else n_q_tiles   # resident KV -> 1 read / batch
    cost = pl.CostEstimate(
        flops=int(2 * B * nq_pad * C * C          # fused Q projection
                  + 4 * B * nq_pad * nk_pad * C),  # QK^T + PV
        transcendentals=int(B * nq_pad * nk_pad),
        bytes_accessed=int(B * C * nq_pad * itemsize          # x (res + Q src)
                           + B * kv_reads * 2 * C * nk_pad * 2  # K/V bf16
                           + B * C * nq_pad * itemsize))      # output

    return pl.pallas_call(
        kernel,
        out_shape=jax.ShapeDtypeStruct((B, C, nq_pad), out_dtype),
        grid_spec=pltpu.PrefetchScalarGridSpec(
            num_scalar_prefetch=0,
            # NOTE(v7x): B * (nq_pad // tq) should stay >= 2 so both TCs get work.
            grid=(B, nq_pad // tq, nk_pad // tk),
            in_specs=[
                pl.BlockSpec((1, C, tq), lambda b, i, j: (b, 0, i)),      # x
                pl.BlockSpec((C, C), lambda b, i, j: (0, 0)),             # Wq
                pl.BlockSpec((1, 2 * C, tk), lambda b, i, j: (b, 0, j)),  # K|V
            ],
            out_specs=pl.BlockSpec((1, C, tq), lambda b, i, j: (b, 0, i)),
            scratch_shapes=[
                pltpu.VMEM((C, tq), jnp.bfloat16),  # Q tile (projected once)
                pltpu.VMEM((1, tq), jnp.float32),   # running max  m
                pltpu.VMEM((1, tq), jnp.float32),   # running sum  l
                pltpu.VMEM((C, tq), jnp.float32),   # output accumulator
            ]),
        compiler_params=pltpu.CompilerParams(
            dimension_semantics=("parallel", "parallel", "arbitrary"),
            vmem_limit_bytes=vmem_limit),
        cost_estimate=cost,
    )(x_pad, wq, kv)


# ----------------------------------------------------------------------------
# Public wrapper: NCHW in / NCHW out, matching the PyTorch forward.
# ----------------------------------------------------------------------------
def _round_up(x, m):
    return ((x + m - 1) // m) * m


def _pick_q_tile(n, max_tile):
    # Lane-dense query tile: multiple of 128, capped at max_tile.
    return min(max_tile, _round_up(n, 128))


def _pick_proj_tile(n_pad, desired):
    # Largest multiple-of-128 divisor of n_pad that is <= desired (stage 1 is
    # memory-bound; bigger tiles get closer to the HBM roofline).
    if n_pad <= desired:
        return n_pad
    t = (desired // 128) * 128
    while n_pad % t != 0:
        t -= 128
    return t


def _stage2_vmem_bytes(C, tq, tk, x_itemsize):
    # Rough per-call VMEM footprint: double-buffered pipeline blocks + scratch.
    x_tile = 2 * C * tq * x_itemsize
    out_tile = 2 * C * tq * x_itemsize
    wq_tile = 2 * C * C * 2
    kv_tile = 2 * 2 * C * tk * 2
    scratch = C * tq * 2 + 2 * tq * 4 + C * tq * 4
    return x_tile + out_tile + wq_tile + kv_tile + scratch


def flatten_cross_attention(featA, featB, params, *, max_tile=512,
                            proj_tile=1024,
                            vmem_limit=48 * 1024 * 1024):
    """featA: (B, C, H1, W1), featB: (B, C, H2, W2)  — PyTorch NCHW layout."""
    B, C, H1, W1 = featA.shape
    _, _, H2, W2 = featB.shape
    if C % 8 != 0:
        raise ValueError("channels must be a multiple of 8 for this kernel")
    N1, N2 = H1 * W1, H2 * W2
    scale = float(C) ** 0.5

    t1 = _pick_q_tile(N1, max_tile)
    t2 = _pick_q_tile(N2, max_tile)
    N1p = _round_up(N1, t1)
    N2p = _round_up(N2, t2)

    # NCHW -> (B, C, N): pure reshape (lane axis = spatial), then pad lanes.
    xA = jnp.pad(featA.reshape(B, C, N1), ((0, 0), (0, 0), (0, N1p - N1)))
    xB = jnp.pad(featB.reshape(B, C, N2), ((0, 0), (0, 0), (0, N2p - N2)))

    # Weights: Wq kept separate (fused into stage 2); K/V stacked to (2C, C).
    wqA = params["wqA"].astype(jnp.bfloat16)
    wqB = params["wqB"].astype(jnp.bfloat16)
    wkvA = jnp.concatenate([params["wkA"], params["wvA"]], axis=0).astype(jnp.bfloat16)
    wkvB = jnp.concatenate([params["wkB"], params["wvB"]], axis=0).astype(jnp.bfloat16)

    # Stage 1: K/V projection once per stream (no Q round-trip through HBM).
    kvA = _project_kv(xA.astype(jnp.bfloat16), wkvA,
                      _pick_proj_tile(N1p, proj_tile), vmem_limit)
    kvB = _project_kv(xB.astype(jnp.bfloat16), wkvB,
                      _pick_proj_tile(N2p, proj_tile), vmem_limit)

    x_itemsize = jnp.dtype(featA.dtype).itemsize

    def pick_tk(nk_pad, base_tile, tq):
        # Full K/V residency when it fits: constant block index across the q
        # axis -> K/V fetched from HBM once per batch instead of per q-tile.
        if _stage2_vmem_bytes(C, tq, nk_pad, x_itemsize) <= int(vmem_limit * 0.9):
            return nk_pad
        return base_tile

    tkB = pick_tk(N2p, t2, t1)   # A attends to B
    tkA = pick_tk(N1p, t1, t2)   # B attends to A

    # Stage 2: A attends to B, B attends to A (flash, online softmax).
    outA = _flash_cross_attention(xA, wqA, kvB, scale=scale, nk_valid=N2,
                                  tq=t1, tk=tkB, vmem_limit=vmem_limit)
    outB = _flash_cross_attention(xB, wqB, kvA, scale=scale, nk_valid=N1,
                                  tq=t2, tk=tkA, vmem_limit=vmem_limit)

    A_out = outA[:, :, :N1].reshape(B, C, H1, W1)
    B_out = outB[:, :, :N2].reshape(B, C, H2, W2)
    return A_out, B_out


# ----------------------------------------------------------------------------
# Pure-JAX f32 reference mirroring the PyTorch forward (for verification).
# ----------------------------------------------------------------------------
def _reference(featA, featB, params):
    B, C, H1, W1 = featA.shape
    _, _, H2, W2 = featB.shape
    scale = float(C) ** 0.5

    def proj(x, w):      # 1x1 conv, no bias
        return jnp.einsum("oc,bchw->bohw", w, x)

    def flat(x):
        return x.reshape(x.shape[0], x.shape[1], -1)

    qA_ = flat(proj(featA, params["wqA"]))
    kA_ = flat(proj(featA, params["wkA"]))
    vA_ = flat(proj(featA, params["wvA"]))
    qB_ = flat(proj(featB, params["wqB"]))
    kB_ = flat(proj(featB, params["wkB"]))
    vB_ = flat(proj(featB, params["wvB"]))

    attnA = jax.nn.softmax(jnp.einsum("bcn,bcm->bnm", qA_, kB_) / scale, axis=-1)
    outA = jnp.einsum("bnm,bcm->bcn", attnA, vB_)
    attnB = jax.nn.softmax(jnp.einsum("bcm,bcn->bmn", qB_, kA_) / scale, axis=-1)
    outB = jnp.einsum("bmn,bcn->bcm", attnB, vA_)

    A_out = featA + outA.reshape(B, C, H1, W1)
    B_out = featB + outB.reshape(B, C, H2, W2)
    return A_out, B_out


if __name__ == "__main__":
    key = jax.random.PRNGKey(0)
    B, C = 2, 32
    H1, W1 = 8, 8     # featA spatial (N1 = 64)
    H2, W2 = 4, 8     # featB spatial (N2 = 32), deliberately different

    keys = jax.random.split(key, 8)
    featA = jax.random.normal(keys[0], (B, C, H1, W1), dtype=jnp.float32)
    featB = jax.random.normal(keys[1], (B, C, H2, W2), dtype=jnp.float32)

    # Six 1x1-conv weights, shape [C_out, C_in], no bias.
    params = {
        "wqA": 0.1 * jax.random.normal(keys[2], (C, C), dtype=jnp.float32),
        "wkA": 0.1 * jax.random.normal(keys[3], (C, C), dtype=jnp.float32),
        "wvA": 0.1 * jax.random.normal(keys[4], (C, C), dtype=jnp.float32),
        "wqB": 0.1 * jax.random.normal(keys[5], (C, C), dtype=jnp.float32),
        "wkB": 0.1 * jax.random.normal(keys[6], (C, C), dtype=jnp.float32),
        "wvB": 0.1 * jax.random.normal(keys[7], (C, C), dtype=jnp.float32),
    }

    A_out, B_out = flatten_cross_attention(featA, featB, params)
    jax.block_until_ready((A_out, B_out))

    A_ref, B_ref = _reference(featA, featB, params)
    assert A_out.shape == (B, C, H1, W1) and B_out.shape == (B, C, H2, W2)
    # bf16 MXU matmuls (f32 accumulation) + approx reciprocal -> relaxed
    # tolerance vs the f32 reference (intentional).
    assert jnp.allclose(A_out, A_ref, atol=3e-2, rtol=3e-2)
    assert jnp.allclose(B_out, B_ref, atol=3e-2, rtol=3e-2)

    print("KERNEL_OK")
</pallas_src>

<mosaic_0001>
module attributes {stable_mosaic.version = 11 : i64} {
  func.func @_kv_proj_kernel(%arg0: i32, %arg1: i32, %arg2: memref<1x32x128xbf16, #tpu.memory_space<vmem>>, %arg3: memref<64x32xbf16, #tpu.memory_space<vmem>>, %arg4: memref<1x64x128xbf16, #tpu.memory_space<vmem>>) attributes {dimension_semantics = [#tpu.dimension_semantics<parallel>, #tpu.dimension_semantics<parallel>], iteration_bounds = array<i64: 2, 1>, scalar_prefetch = 0 : i64, scratch_operands = 0 : i64, tpu.core_type = #tpu.core_type<tc>, window_params = [{transform_indices = @transform_0, window_bounds = array<i64: 1, 32, 128>}, {pipeline_mode = #tpu.pipeline_mode<synchronous>, transform_indices = @transform_1, window_bounds = array<i64: 64, 32>}, {transform_indices = @transform_2, window_bounds = array<i64: 1, 64, 128>}]} {
    %c0 = arith.constant 0 : index
    %c0_0 = arith.constant 0 : index
    %0 = vector.load %arg3[%c0, %c0_0] : memref<64x32xbf16, #tpu.memory_space<vmem>>, vector<64x32xbf16>
    %c0_1 = arith.constant 0 : index
    %c0_2 = arith.constant 0 : index
    %c0_3 = arith.constant 0 : index
    %1 = vector.load %arg2[%c0_1, %c0_2, %c0_3] : memref<1x32x128xbf16, #tpu.memory_space<vmem>>, vector<1x32x128xbf16>
    %2 = vector.shape_cast %1 : vector<1x32x128xbf16> to vector<32x128xbf16>
    %cst = arith.constant dense<0.000000e+00> : vector<64x128xf32>
    %3 = tpu.matmul %0, %2, %cst {dimension_numbers = #tpu.dot_dimension_numbers<[1], [0], [0], [1], [0, 0, 1, 1], [], []>} : vector<64x32xbf16>, vector<32x128xbf16>, vector<64x128xf32> -> vector<64x128xf32>
    %4 = arith.truncf %3 : vector<64x128xf32> to vector<64x128xbf16>
    %c0_4 = arith.constant 0 : index
    %c0_5 = arith.constant 0 : index
    %c0_6 = arith.constant 0 : index
    %5 = vector.load %arg4[%c0_4, %c0_5, %c0_6] : memref<1x64x128xbf16, #tpu.memory_space<vmem>>, vector<1x64x128xbf16>
    %6 = vector.shape_cast %5 : vector<1x64x128xbf16> to vector<64x128xbf16>
    %7 = vector.shape_cast %4 : vector<64x128xbf16> to vector<1x64x128xbf16>
    tpu.vector_store %arg4[%c0_4, %c0_5, %c0_6], %7 {strides = array<i32>} : memref<1x64x128xbf16, #tpu.memory_space<vmem>>, vector<1x64x128xbf16>,
    return
  }
  func.func @transform_0(%arg0: i32, %arg1: i32) -> (i32, i32, i32) {
    %c0_i32 = arith.constant 0 : i32
    %c0_i32_0 = arith.constant 0 : i32
    return %arg0, %c0_i32, %arg1 : i32, i32, i32
  }
  func.func @transform_1(%arg0: i32, %arg1: i32) -> (i32, i32) {
    %c0_i32 = arith.constant 0 : i32
    %c0_i32_0 = arith.constant 0 : i32
    %c0_i32_1 = arith.constant 0 : i32
    return %c0_i32, %c0_i32_0 : i32, i32
  }
  func.func @transform_2(%arg0: i32, %arg1: i32) -> (i32, i32, i32) {
    %c0_i32 = arith.constant 0 : i32
    %c0_i32_0 = arith.constant 0 : i32
    return %arg0, %c0_i32, %arg1 : i32, i32, i32
  }
}

</mosaic_0001>

<bundles_post_ra>
// kernel: tpu_custom_call.1
= control target key start
LH: loop header
LB: loop body
LE: loop exit
PB: predicated region body
PF: predicated region fallthrough
CT: control target
= control target key end

     0   :  { %7 = vsyncpa [#allocation3], 0  ;;  %s801_s0 = inlined_call_operand.vmem [shape: bf16[2,32,128], index: 0, kind: input, shape index: {}]   ;;  %s802_s1 = inlined_call_operand.vmem [shape: bf16[64,32], index: 1, kind: input, shape index: {}]   ;;  %s803_s2 = inlined_call_operand.hbm [shape: bf16[2,64,128], index: 2, kind: output, shape index: {}]  }
   0x1   :  { %9 = vsyncpa [#allocation3 + $0x1], 0  ;;  %s670_s9 = smov 0   ;;  %s672_s10 = smov 0  }
   0x2   :  { %s674_s11 = smov 0   ;;  %s676_s12 = smov 0  }
   0x3   :  { %s678_s13 = smov 0   ;;  %s680_s14 = smov 0  }
   0x4 LB: > { %s423_s15 = sadd.s32 4294967295, %s650_s14   ;;  %s424_s16 = sadd.s32 4294967294, %s650_s14   ;;  %s650_s14 = sphi %s680_s14, %s15_s14   ;;  %s646_s13 = sphi %s678_s13, %s810_s13   ;;  %s642_s12 = sphi %s676_s12, %s809_s12   ;;  %s638_s11 = sphi %s674_s11, %s808_s11   ;;  %s634_s10 = sphi %s672_s10, %s807_s10   ;;  %s630_s9 = sphi %s670_s9, %s806_s9  }
   0x5   : > { %s27_s17 = sadd.s32 1, %s646_s13  ;;  %s85_s18 = sadd.s32 1, %s638_s11 }
   0x6   : > { %p29_p0 = scmp.ge.s32.totalorder %s27_s17, 2  ;;  %p95_p1 = scmp.ne.s32.totalorder %s638_s11, %s634_s10 }
   0x7   : > { %p96_p2 = scmp.eq.s32.totalorder %s423_s15, 1  ;;  %p101_p3 = scmp.ne.s32.totalorder %s634_s10, %s630_s9 }
   0x8   : > { %s812_s17 = smov (%p29_p0, %s27_s17), 0  ;;  %p102_p5 = scmp.eq.s32.totalorder %s424_s16, 1 }
   0x9   : > { %p710_p4 = por %p96_p2, %p95_p1  ;;  %s80_s20 = ssub.s32 %s646_s13, %s812_s17 }
   0xa   : > { %p427_p6 = scmp.ge.s32.totalorder %s650_s14, 1  ;;  %p83_p7 = scmp.eq.s32.totalorder %s80_s20, 0 }
   0xb   : > { %p717_p8 = por %p102_p5, %p101_p3  ;;  %p134_p9 = scmp.lt.s32.totalorder %s650_s14, 3 }
   0xc   : > { %s723_s22 = scalar_select %p83_p7, %s638_s11, %s85_s18  }
   0xd   : > { %p135_p10 = pnand %p427_p6, %p134_p9 }
   0xe   : > { %p159_p11 = scmp.lt.s32.totalorder (!%p135_p10), %s642_s12, 1  ;;  %v568_v0 = vld [vmem:[%s802_s1] sm:$0xff] (!%p135_p10)   ;;  %vm212_vm0 = vcmask (!%p135_p10), 261120   ;;  %v569_v1 = vld [vmem:[%s802_s1 + $0x10] sm:$0xff] (!%p135_p10)   ;;  %v570_v4 = vld [vmem:[%s802_s1 + $0x8] sm:$0xff] (!%p135_p10)   ;;  %s156_s8 = sand.u32 (!%p135_p10), 1, %s634_s10  }
   0xf   : > { %138 = sbr.rel (%p135_p10) target bundleno = 267 (0x10b), region = 28  ;;  %497 = vmatprep.mubr.msk.bf16.mxu0 (!%p135_p10), %vm212_vm0, %v568_v0  ;;  %501 = vmatprep.mubr.msk.bf16.mxu1 (!%p135_p10), %vm212_vm0, %v569_v1  ;;  %v571_v5 = vld [vmem:[%s802_s1 + $0x18] sm:$0xff] (!%p135_p10)   ;;  %s428_s15 = sshll.u32 (!%p135_p10), %s156_s8, 5 }
  0x10   : > { %s158_s16 = scalar_lea.vmem (!%p135_p10), [#allocation2], %s428_s15  ;;  %s463_s20 = sshll.u32 (!%p135_p10), %s642_s12, 9 }
  0x11   : > { %s345_s18 = sshll.u32 (!%p135_p10), %s158_s16, 4  ;;  %s753_s25 = scalar_lea.hbm (!%p135_p10), %s803_s2, %s463_s20  ;;  %s748_s18 = int_to_ptr.vmem [resolvable:$true] %s345_s18 }
  0x12   : > { %s572_s26 = scalar_lea.vmem (!%p135_p10), %s748_s18, 512 }
  0x13   : > { %p573_p12 = scmp.ne.s32.totalorder (!%p135_p10), %s748_s18, %s572_s26 }
  0x15   : > { %p574_p13 = pnand (!%p135_p10), %p573_p12, %p710_p4 }
  0x16   : > { %s160_s27 = scalar_select %p159_p11, %s642_s12, 1 }
  0x17   : > { %s755_s12 = scalar_lea.sflag [#allocation3], %s156_s8  ;;  %p575_p0 = pneg %p574_p13 }
  0x18   : > { %s454_s28 = sshll.u32 %s160_s27, 4  ;;  %s652_s27 = smov [#allocation2]  }
  0x19   : > { %s166_s3 = scalar_lea.vmem %s801_s0, %s454_s28  ;;  %s576_s28 = sshll.u32 %s652_s27, 4  ;;  %s577_s28 = int_to_ptr.vmem [resolvable:$false] %s576_s28 }
  0x1a   : > { %v566_v2 = vld [vmem:[%s166_s3] sm:$0xff]   ;;  %v567_v3 = vld [vmem:[%s166_s3 + $0x8] sm:$0xff]   ;;  %s578_s29 = scalar_lea.vmem %s577_s28, 1024  ;;  %p579_p1 = scmp.lt.s32.totalorder %s748_s18, %s577_s28 }
  0x1b   : > { %493 = vmatprep.subr.bf16.mxu0 %v566_v2  ;;  %505 = vmatprep.subr.bf16.mxu1 %v566_v2  ;;  %p580_p2 = scmp.lt.s32.totalorder %s578_s29, %s572_s26 }
  0x1c   : > { %494 = vmatpush3.bf16.msra.mxu0 %v566_v2  ;;  %507 = vmatpush3.bf16.msra.mxu1 %v566_v2 }
  0x1d   : > { %495 = vmatprep.subr.bf16.mxu0 %v567_v3  ;;  %506 = vmatprep.subr.bf16.mxu1 %v567_v3  ;;  %p581_p3 = por %p580_p2, %p579_p1 }
  0x1f   : > { %p582_p5 = pnand %p581_p3, %p575_p0 }
  0x20   : > { %496 = vmatpush3.bf16.msra.mxu0 %v567_v3  ;;  %508 = vmatpush3.bf16.msra.mxu1 %v567_v3 }
  0x23   : > { %498 = vmatmul.mubr.msk.bf16.vlgmr.msra.gmra.mrb[0].mxu0 %vm212_vm0, %v570_v4  ;;  %502 = vmatmul.mubr.msk.bf16.vlgmr.msra.gmra.mrb[0].mxu1 %vm212_vm0, %v571_v5 }
  0xf6   : > { %v499_v6 = vpop.f32.mrb[0].mxu0  ;;  %v503_v7 = vpop.f32.mrb[0].mxu1 }
  0xf7   : > { %v259_v8 = vpop.f32.mrb[1].mxu0  ;;  %v275_v9 = vpop.f32.mrb[1].mxu1 }
  0xf8   : > { %v500_v10 = vpop.f32.mrb[2].mxu0  ;;  %v504_v11 = vpop.f32.mrb[2].mxu1 }
  0xf9   : > { %v472_v12 = vpack.c.bf16 %v500_v10, %v499_v6  ;;  %v482_v13 = vpack.c.bf16 %v504_v11, %v503_v7  ;;  %v262_v14 = vpop.f32.mrb[3].mxu0  ;;  %v278_v15 = vpop.f32.mrb[3].mxu1 }
  0xfa   : > { %v467_v16 = vpack.c.bf16 %v262_v14, %v259_v8  ;;  %v477_v17 = vpack.c.bf16 %v278_v15, %v275_v9 }
  0xfb   : > { %484 = vst [vmem:[%s158_s16 + $0x8] sm:$0xff] %v472_v12   ;;  %486 = vst [vmem:[%s158_s16 + $0x18] sm:$0xff] %v482_v13  }
  0xfc   : > { %468 = vst [vmem:[%s158_s16] sm:$0xff] %v467_v16   ;;  %485 = vst [vmem:[%s158_s16 + $0x10] sm:$0xff] %v477_v17  }
  0xfd   : > { %585 = shalt.err (!%p582_p5)
}
  0xfe   : > { %s586_s30 = scalar_lea.hbm %s753_s25, 512  ;;  %s590_s5 = scalar_lea.hbm %s803_s2, 1024 }
  0xff   : > { %p587_p6 = scmp.ne.s32.totalorder %s753_s25, %s586_s30  ;;  %p591_p10 = scmp.lt.u32.totalorder %s753_s25, %s803_s2 }
 0x100   : > { %p592_p11 = scmp.lt.u32.totalorder %s590_s5, %s586_s30  ;;  %p594_p13 = scmp.lt.u32.totalorder %s586_s30, %s753_s25 }
 0x101   : > { %p588_p7 = pnand %p587_p6, %p710_p4 }
 0x102   : > { %p593_p12 = por %p592_p11, %p591_p10 }
 0x103   : > { %p589_p9 = pneg %p588_p7 }
 0x104   : > { %p595_p0 = por %p594_p13, %p593_p12 }
 0x106   : > { %p596_p1 = pnand %p595_p0, %p589_p9 }
 0x108   : > { %599 = shalt.err (!%p596_p1)
}
 0x109   : > { %s653_s8 = smov 64   ;;  %s654_s15 = smov 4  }
 0x10a   : > { %509 = dma.vmem_to_hbm [thread:$0]  (%p710_p4), %s748_s18, 512, %s753_s25, %s755_s12, %s653_s8, %s653_s8, %s654_s15  }
 0x10b PF: > { %p515_p2 = scmp.ge.s32.totalorder %s650_s14, 2  ;;  %s360_s16 = sand.u32 1, %s630_s9  }
 0x10c   : > { %s361_s20 = scalar_lea.sflag [#allocation3], %s360_s16 }
 0x10d   : > { %p512_p3 = pnand %p515_p2, %p717_p8 }
 0x10f   : > { %625 = dma.done.wait (!%p512_p3), %s361_s20, 512  }
 0x110   : > { %627 = vsyncadd (!%p512_p3), %s361_s20, 4294966784  ;;  %s15_s14 = sadd.s32 1, %s650_s14   ;;  %s806_s9 = smov %s634_s10 }
 0x111   : > { %p12_p5 = scmp.ge.s32.totalorder %s15_s14, 4   ;;  %s807_s10 = smov %s638_s11 }
 0x112   : > { %s808_s11 = smov %s723_s22  ;;  %s809_s12 = smov %s646_s13 }
 0x113   : > { %s810_s13 = smov %s812_s17  ;;  %14 = sbr.rel (!%p12_p5) target bundleno = 4 (0x4), region = 63 }
 0x11a   :  { %366 = vsyncpa [#allocation3], 1 }
 0x11b   :  { %368 = vsyncpa [#allocation3 + $0x1], 1 }

</bundles_post_ra>
